<compile_context>
chip_gen: v7x
topology: tpu7x:2x2x1
jax: 0.10.0
libtpu: 0.0.40
codegen_flags: <defaults>
</compile_context>

<pallas_src>
import functools

import jax
import jax.numpy as jnp
from jax.experimental import pallas as pl
from jax.experimental.pallas import tpu as pltpu


# ----------------------------------------------------------------------------
# Kernel
# ----------------------------------------------------------------------------
def sine_kernel(nvalid_ref, fsc_ref,            # SMEM scalar-prefetch refs
                xi_ref, xj_ref, xk_ref,         # (T, E) gathered embedding tiles
                wl1_ref, wl2_ref,               # (E, D) weights (VMEM-resident)
                w2_ref,                         # (1, D) f32 layer2 weight row
                out_ref,                        # (8, 128) partial / accumulator
                *, accumulate, needs_mask):
    delta = fsc_ref[0]
    b1 = fsc_ref[1]
    b2 = fsc_ref[2]
    t = xi_ref.shape[0]

    if accumulate:
        # Output block is resident across the whole ("arbitrary") grid axis.
        @pl.when(pl.program_id(0) == 0)
        def _init():
            out_ref[...] = jnp.zeros_like(out_ref)

    # Three MXU matmuls; wl2 is shared by the xj / xk dots (no concat / slice
    # copies — Mosaic keeps the (E, D) RHS staged across back-to-back dots).
    a = jnp.dot(xi_ref[...], wl1_ref[...], preferred_element_type=jnp.float32)
    bj = jnp.dot(xj_ref[...], wl2_ref[...], preferred_element_type=jnp.float32)
    bk = jnp.dot(xk_ref[...], wl2_ref[...], preferred_element_type=jnp.float32)

    z1 = jnp.tanh(a + bj + b1)                                           # (T, D) f32
    z2 = jnp.tanh(a + bk + b1)                                           # (T, D) f32

    # layer2: VPU multiply + XLU lane reduction (no 1-lane MXU output).
    w2row = w2_ref[...]                                                  # (1, D) f32
    f_pos = jnp.tanh(jnp.sum(z1 * w2row, axis=-1, keepdims=True) + b2)   # (T, 1)
    f_neg = jnp.tanh(jnp.sum(z2 * w2row, axis=-1, keepdims=True) + b2)   # (T, 1)

    hinge = jnp.maximum(f_pos - f_neg + delta, 0.0)                      # (T, 1)

    if needs_mask:
        # Padded rows exist only in the last tile; for interior tiles the
        # predicate is trivially true and the select sits in VALU slack.
        n_valid = nvalid_ref[0]
        rows = (pl.program_id(0) * t
                + jax.lax.broadcasted_iota(jnp.int32, (t, 1), 0))
        hinge = jnp.where(rows < n_valid, hinge, 0.0)

    s = jnp.sum(hinge)                                                   # scalar f32

    # Lane-dense (8, 128) carrier block with the partial sum at [0, 0].
    zero_pos = (jax.lax.broadcasted_iota(jnp.int32, (8, 128), 0)
                + jax.lax.broadcasted_iota(jnp.int32, (8, 128), 1)) == 0
    blk = jnp.where(zero_pos, s, 0.0)

    if accumulate:
        out_ref[...] += blk          # resident accumulator, written back once
    else:
        out_ref[...] = blk           # per-tile partial, reduced in JAX


# ----------------------------------------------------------------------------
# Wrapper helpers
# ----------------------------------------------------------------------------
def _vmem_capacity_bytes():
    try:
        return int(pltpu.get_tpu_info().vmem_capacity_bytes)
    except Exception:
        return 64 * 1024 * 1024      # conservative: v7x per-TensorCore VMEM


def _single_tensorcore_device():
    """True for known single-TC parts (v5e / v6e); False otherwise (v7x etc.)."""
    try:
        kind = jax.devices()[0].device_kind.lower()
    except Exception:
        return False
    return any(tag in kind for tag in ("v5 lite", "v5e", "v6 lite", "v6e"))


def _pick_tile_n(n, embed, dim, in_itemsize):
    """Largest batch tile (multiple of 8, capped at 8192) whose footprint —
    double-buffered gathered tiles plus lane-padded f32 intermediates — stays
    within ~45% of this device's VMEM."""
    lane = lambda x: max(((x + 127) // 128) * 128, 128)
    sub8 = lambda x: max(((x + 7) // 8) * 8, 8)

    cap = _vmem_capacity_bytes()
    # Resident weights are still double-buffered by default (tiny for small
    # E x D; use pipeline_mode=pl.Buffered(1) if they ever grow large).
    fixed = 2 * (2 * sub8(embed) * lane(dim) * in_itemsize + 8 * lane(dim) * 4)
    budget = max(int(cap * 0.45) - fixed, 1 << 20)

    per_row = (3 * 2 * lane(embed) * in_itemsize   # xi/xj/xk tiles, 2 buffers each
               + 10 * lane(dim) * 4)               # live f32 (T,D)/(T,1) temporaries
    t = (budget // max(per_row, 1)) // 8 * 8
    t = max(8, min(8192, t))
    return int(min(t, sub8(n)))


# ----------------------------------------------------------------------------
# Forward
# ----------------------------------------------------------------------------
def sine_forward(xi, xj, xk, params, *, delta,
                 compute_dtype=jnp.bfloat16, tile_n=None, accumulate=None):
    """xi, xj, xk: int (N,) node ids.  Returns scalar f32; same math as
    SINE.forward in the PyTorch reference."""
    emb, wl1, wl2, w2 = (params["embedding"], params["wl1"],
                         params["wl2"], params["w2"])
    b1, b2 = params["bias1"], params["bias2"]

    n = int(xi.shape[0])
    E = emb.shape[1]
    D = wl1.shape[1]

    if tile_n is None:
        tile_n = _pick_tile_n(n, E, D, jnp.dtype(compute_dtype).itemsize)
    if accumulate is None:
        accumulate = _single_tensorcore_device()

    num_tiles = int(pl.cdiv(n, tile_n))
    n_pad = num_tiles * tile_n
    needs_mask = n_pad != n

    # Pad the cheap int32 ids (not the gathered floats); padded ids hit row 0
    # and the in-kernel n_valid mask zeroes their hinge contribution.
    xi = jnp.asarray(xi, jnp.int32)
    xj = jnp.asarray(xj, jnp.int32)
    xk = jnp.asarray(xk, jnp.int32)
    if needs_mask:
        pad = (0, n_pad - n)
        xi, xj, xk = jnp.pad(xi, pad), jnp.pad(xj, pad), jnp.pad(xk, pad)

    # nn.Embedding gather kept in XLA (see header TODO).  Cast the table first
    # so the gather reads/writes compute_dtype (half traffic for bf16).
    emb_c = emb.astype(compute_dtype)
    xi_e = jnp.take(emb_c, xi, axis=0)
    xj_e = jnp.take(emb_c, xj, axis=0)
    xk_e = jnp.take(emb_c, xk, axis=0)

    wl1_c = wl1.astype(compute_dtype)
    wl2_c = wl2.astype(compute_dtype)
    w2_row = w2.reshape(1, D).astype(jnp.float32)   # tiny; stays f32

    # Runtime SMEM scalars (delta / biases / n_valid).
    fscalars = jnp.concatenate([
        jnp.asarray(delta, jnp.float32).reshape(1),
        b1.reshape(1).astype(jnp.float32),
        b2.reshape(1).astype(jnp.float32)])
    nvalid = jnp.asarray([n], jnp.int32)

    emb_spec = pl.BlockSpec((tile_n, E), lambda i, nv, fs: (i, 0))
    w_spec = pl.BlockSpec((E, D), lambda i, nv, fs: (0, 0))        # resident
    w2_spec = pl.BlockSpec((1, D), lambda i, nv, fs: (0, 0))       # resident

    if accumulate:
        # Single-TC parts: resident accumulator block, written back once.
        out_shape = jax.ShapeDtypeStruct((8, 128), jnp.float32)
        out_spec = pl.BlockSpec((8, 128), lambda i, nv, fs: (0, 0))
        dims = ("arbitrary",)
    else:
        # Multi-TC parts (v7x): per-tile partials, grid shards across cores.
        out_shape = jax.ShapeDtypeStruct((num_tiles * 8, 128), jnp.float32)
        out_spec = pl.BlockSpec((8, 128), lambda i, nv, fs: (i, 0))
        dims = ("parallel",)

    vmem_cap = _vmem_capacity_bytes()
    kernel = functools.partial(sine_kernel,
                               accumulate=accumulate, needs_mask=needs_mask)

    partials = pl.pallas_call(
        kernel,
        out_shape=out_shape,
        grid_spec=pltpu.PrefetchScalarGridSpec(
            num_scalar_prefetch=2,
            grid=(num_tiles,),
            in_specs=[emb_spec, emb_spec, emb_spec, w_spec, w_spec, w2_spec],
            out_specs=out_spec,
        ),
        compiler_params=pltpu.CompilerParams(
            dimension_semantics=dims,
            vmem_limit_bytes=min(int(0.85 * vmem_cap), 110 * 1024 * 1024),
        ),
    )(nvalid, fscalars, xi_e, xj_e, xk_e, wl1_c, wl2_c, w2_row)

    # Accumulator mode: only [0,0] is nonzero; partial mode: one entry per tile.
    return jnp.sum(partials)


# ----------------------------------------------------------------------------
# Params / reference
# ----------------------------------------------------------------------------
def init_params(key, n_vocab, embed, dim):
    k_emb, k_l1, k_l2, k_2 = jax.random.split(key, 4)
    return {
        # nn.Embedding(n_vocab + 1, embed)
        "embedding": jax.random.normal(k_emb, (n_vocab + 1, embed), jnp.float32),
        # nn.Linear(embed, dim, bias=False) weights, stored as (in, out) = W.T
        "wl1": jax.random.normal(k_l1, (embed, dim), jnp.float32) * 0.1,
        "wl2": jax.random.normal(k_l2, (embed, dim), jnp.float32) * 0.1,
        # nn.Linear(dim, 1, bias=False) weights, stored as (in, out) = W.T
        "w2": jax.random.normal(k_2, (dim, 1), jnp.float32) * 0.1,
        # nn.Parameter(torch.zeros(1)) x2
        "bias1": jnp.zeros((1,), jnp.float32),
        "bias2": jnp.zeros((1,), jnp.float32),
    }


def reference_forward(xi, xj, xk, params, *, delta):
    """Pure-JAX reference mirroring the PyTorch forward."""
    e = params["embedding"]
    xi_e, xj_e, xk_e = e[xi], e[xj], e[xk]
    a = xi_e @ params["wl1"]
    zl1 = jnp.tanh(a + xj_e @ params["wl2"] + params["bias1"])
    zl2 = jnp.tanh(a + xk_e @ params["wl2"] + params["bias1"])
    f_pos = jnp.tanh(zl1 @ params["w2"] + params["bias2"])
    f_neg = jnp.tanh(zl2 @ params["w2"] + params["bias2"])
    return jnp.sum(jax.nn.relu(f_pos - f_neg + delta))


# ----------------------------------------------------------------------------
# Smoke tests
# ----------------------------------------------------------------------------
if __name__ == "__main__":
    n_vocab, embed, dim, delta = 50, 32, 32, 0.5

    key = jax.random.PRNGKey(0)
    k_params, k_a, k_b, _ = jax.random.split(key, 4)
    params = init_params(k_params, n_vocab, embed, dim)

    def make_triples(kk, batch):
        ki, kj, kk2 = jax.random.split(kk, 3)
        xi = jax.random.randint(ki, (batch,), 0, n_vocab + 1, dtype=jnp.int32)
        xj = jax.random.randint(kj, (batch,), 0, n_vocab + 1, dtype=jnp.int32)
        xk = jax.random.randint(kk2, (batch,), 0, n_vocab + 1, dtype=jnp.int32)
        return xi, xj, xk

    # 1) f32 compute, auto tile / auto output mode, single tile, no padding.
    xi, xj, xk = make_triples(k_a, 8)
    fwd = jax.jit(functools.partial(sine_forward, delta=delta,
                                    compute_dtype=jnp.float32))
    out = jax.block_until_ready(fwd(xi, xj, xk, params))
    ref = reference_forward(xi, xj, xk, params, delta=delta)
    assert jnp.allclose(out, ref, rtol=1e-5, atol=1e-5), (out, ref)

    # 2) multi-tile grid, padded (masked) last tile, in-kernel accumulator path.
    xi, xj, xk = make_triples(k_b, 20)
    fwd_acc = jax.jit(functools.partial(sine_forward, delta=delta, tile_n=8,
                                        compute_dtype=jnp.float32,
                                        accumulate=True))
    out = jax.block_until_ready(fwd_acc(xi, xj, xk, params))
    ref = reference_forward(xi, xj, xk, params, delta=delta)
    assert jnp.allclose(out, ref, rtol=1e-5, atol=1e-5), (out, ref)

    # 3) same inputs, per-tile-partials ("parallel") path.
    fwd_par = jax.jit(functools.partial(sine_forward, delta=delta, tile_n=8,
                                        compute_dtype=jnp.float32,
                                        accumulate=False))
    out = jax.block_until_ready(fwd_par(xi, xj, xk, params))
    assert jnp.allclose(out, ref, rtol=1e-5, atol=1e-5), (out, ref)

    # 4) default bf16 MXU operands (tanh / hinge / accumulation stay f32).
    fwd_bf16 = jax.jit(functools.partial(sine_forward, delta=delta, tile_n=8))
    out_bf16 = jax.block_until_ready(fwd_bf16(xi, xj, xk, params))
    assert jnp.allclose(out_bf16, ref, rtol=5e-2, atol=5e-2), (out_bf16, ref)

    print("KERNEL_OK")
</pallas_src>

<mosaic_0001>
module attributes {stable_mosaic.version = 11 : i64} {
  func.func @sine_kernel(%arg0: i32, %arg1: memref<1xi32, #tpu.memory_space<smem>>, %arg2: memref<3xf32, #tpu.memory_space<smem>>, %arg3: memref<8x32xf32, #tpu.memory_space<vmem>>, %arg4: memref<8x32xf32, #tpu.memory_space<vmem>>, %arg5: memref<8x32xf32, #tpu.memory_space<vmem>>, %arg6: memref<32x32xf32, #tpu.memory_space<vmem>>, %arg7: memref<32x32xf32, #tpu.memory_space<vmem>>, %arg8: memref<1x32xf32, #tpu.memory_space<vmem>>, %arg9: memref<8x128xf32, #tpu.memory_space<vmem>>) attributes {dimension_semantics = [#tpu.dimension_semantics<parallel>], iteration_bounds = array<i64: 1>, scalar_prefetch = 2 : i64, scratch_operands = 0 : i64, tpu.core_type = #tpu.core_type<tc>, window_params = [{transform_indices = @transform_0, window_bounds = array<i64: 8, 32>}, {transform_indices = @transform_1, window_bounds = array<i64: 8, 32>}, {transform_indices = @transform_2, window_bounds = array<i64: 8, 32>}, {pipeline_mode = #tpu.pipeline_mode<synchronous>, transform_indices = @transform_3, window_bounds = array<i64: 32, 32>}, {pipeline_mode = #tpu.pipeline_mode<synchronous>, transform_indices = @transform_4, window_bounds = array<i64: 32, 32>}, {pipeline_mode = #tpu.pipeline_mode<synchronous>, transform_indices = @transform_5, window_bounds = array<i64: 1, 32>}, {transform_indices = @transform_6, window_bounds = array<i64: 8, 128>}]} {
    %c0 = arith.constant 0 : index
    %0 = memref.load %arg2[%c0] : memref<3xf32, #tpu.memory_space<smem>>
    %c1 = arith.constant 1 : index
    %1 = memref.load %arg2[%c1] : memref<3xf32, #tpu.memory_space<smem>>
    %c2 = arith.constant 2 : index
    %2 = memref.load %arg2[%c2] : memref<3xf32, #tpu.memory_space<smem>>
    %c0_0 = arith.constant 0 : index
    %c0_1 = arith.constant 0 : index
    %3 = vector.load %arg3[%c0_0, %c0_1] : memref<8x32xf32, #tpu.memory_space<vmem>>, vector<8x32xf32>
    %c0_2 = arith.constant 0 : index
    %c0_3 = arith.constant 0 : index
    %4 = vector.load %arg6[%c0_2, %c0_3] : memref<32x32xf32, #tpu.memory_space<vmem>>, vector<32x32xf32>
    %cst = arith.constant dense<0.000000e+00> : vector<8x32xf32>
    %5 = tpu.matmul %3, %4, %cst {dimension_numbers = #tpu.dot_dimension_numbers<[1], [0], [0], [1], [0, 0, 1, 1], [], []>} : vector<8x32xf32>, vector<32x32xf32>, vector<8x32xf32> -> vector<8x32xf32>
    %c0_4 = arith.constant 0 : index
    %c0_5 = arith.constant 0 : index
    %6 = vector.load %arg4[%c0_4, %c0_5] : memref<8x32xf32, #tpu.memory_space<vmem>>, vector<8x32xf32>
    %c0_6 = arith.constant 0 : index
    %c0_7 = arith.constant 0 : index
    %7 = vector.load %arg7[%c0_6, %c0_7] : memref<32x32xf32, #tpu.memory_space<vmem>>, vector<32x32xf32>
    %cst_8 = arith.constant dense<0.000000e+00> : vector<8x32xf32>
    %8 = tpu.matmul %6, %7, %cst_8 {dimension_numbers = #tpu.dot_dimension_numbers<[1], [0], [0], [1], [0, 0, 1, 1], [], []>} : vector<8x32xf32>, vector<32x32xf32>, vector<8x32xf32> -> vector<8x32xf32>
    %c0_9 = arith.constant 0 : index
    %c0_10 = arith.constant 0 : index
    %9 = vector.load %arg5[%c0_9, %c0_10] : memref<8x32xf32, #tpu.memory_space<vmem>>, vector<8x32xf32>
    %c0_11 = arith.constant 0 : index
    %c0_12 = arith.constant 0 : index
    %10 = vector.load %arg7[%c0_11, %c0_12] : memref<32x32xf32, #tpu.memory_space<vmem>>, vector<32x32xf32>
    %cst_13 = arith.constant dense<0.000000e+00> : vector<8x32xf32>
    %11 = tpu.matmul %9, %10, %cst_13 {dimension_numbers = #tpu.dot_dimension_numbers<[1], [0], [0], [1], [0, 0, 1, 1], [], []>} : vector<8x32xf32>, vector<32x32xf32>, vector<8x32xf32> -> vector<8x32xf32>
    %12 = arith.addf %5, %8 : vector<8x32xf32>
    %13 = vector.broadcast %1 : f32 to vector<8x32xf32>
    %14 = arith.addf %12, %13 : vector<8x32xf32>
    %15 = math.tanh %14 : vector<8x32xf32>
    %16 = arith.addf %5, %11 : vector<8x32xf32>
    %17 = vector.broadcast %1 : f32 to vector<8x32xf32>
    %18 = arith.addf %16, %17 : vector<8x32xf32>
    %19 = math.tanh %18 : vector<8x32xf32>
    %c0_14 = arith.constant 0 : index
    %c0_15 = arith.constant 0 : index
    %20 = vector.load %arg8[%c0_14, %c0_15] : memref<1x32xf32, #tpu.memory_space<vmem>>, vector<1x32xf32>
    %21 = vector.broadcast %20 : vector<1x32xf32> to vector<8x32xf32>
    %22 = arith.mulf %15, %21 : vector<8x32xf32>
    %cst_16 = arith.constant dense<0.000000e+00> : vector<8xf32>
    %23 = vector.multi_reduction <add>, %22, %cst_16 [1] : vector<8x32xf32> to vector<8xf32>
    %24 = vector.shape_cast %23 : vector<8xf32> to vector<8x1xf32>
    %25 = vector.broadcast %2 : f32 to vector<8x1xf32>
    %26 = arith.addf %24, %25 : vector<8x1xf32>
    %27 = math.tanh %26 : vector<8x1xf32>
    %28 = vector.broadcast %20 : vector<1x32xf32> to vector<8x32xf32>
    %29 = arith.mulf %19, %28 : vector<8x32xf32>
    %cst_17 = arith.constant dense<0.000000e+00> : vector<8xf32>
    %30 = vector.multi_reduction <add>, %29, %cst_17 [1] : vector<8x32xf32> to vector<8xf32>
    %31 = vector.shape_cast %30 : vector<8xf32> to vector<8x1xf32>
    %32 = vector.broadcast %2 : f32 to vector<8x1xf32>
    %33 = arith.addf %31, %32 : vector<8x1xf32>
    %34 = math.tanh %33 : vector<8x1xf32>
    %35 = arith.subf %27, %34 : vector<8x1xf32>
    %36 = vector.broadcast %0 : f32 to vector<8x1xf32>
    %37 = arith.addf %35, %36 : vector<8x1xf32>
    %cst_18 = arith.constant 0.000000e+00 : f32
    %38 = vector.broadcast %cst_18 : f32 to vector<8x1xf32>
    %39 = arith.maximumf %37, %38 : vector<8x1xf32>
    %40 = vector.shape_cast %39 : vector<8x1xf32> to vector<1x8x1xf32>
    %cst_19 = arith.constant dense<0.000000e+00> : vector<1xf32>
    %41 = vector.multi_reduction <add>, %40, %cst_19 [1, 2] : vector<1x8x1xf32> to vector<1xf32>
    %42 = vector.shape_cast %41 : vector<1xf32> to vector<1x1x1xf32>
    %43 = vector.extract %42[0, 0, 0] : f32 from vector<1x1x1xf32>
    %44 = tpu.iota {dimensions = array<i32: 0>} : vector<8x128xi32>
    %45 = tpu.iota {dimensions = array<i32: 1>} : vector<8x128xi32>
    %46 = arith.addi %44, %45 : vector<8x128xi32>
    %c0_i32 = arith.constant 0 : i32
    %47 = vector.broadcast %c0_i32 : i32 to vector<8x128xi32>
    %48 = arith.cmpi eq, %46, %47 : vector<8x128xi32>
    %cst_20 = arith.constant 0.000000e+00 : f32
    %49 = vector.broadcast %43 : f32 to vector<8x128xf32>
    %50 = vector.broadcast %cst_20 : f32 to vector<8x128xf32>
    %51 = arith.select %48, %49, %50 : vector<8x128xi1>, vector<8x128xf32>
    %c0_21 = arith.constant 0 : index
    %c0_22 = arith.constant 0 : index
    %52 = vector.load %arg9[%c0_21, %c0_22] : memref<8x128xf32, #tpu.memory_space<vmem>>, vector<8x128xf32>
    tpu.vector_store %arg9[%c0_21, %c0_22], %51 {strides = array<i32>} : memref<8x128xf32, #tpu.memory_space<vmem>>, vector<8x128xf32>,
    return
  }
  func.func @transform_0(%arg0: i32, %arg1: memref<1xi32, #tpu.memory_space<smem>>, %arg2: memref<3xf32, #tpu.memory_space<smem>>) -> (i32, i32) {
    %c0_i32 = arith.constant 0 : i32
    %c0_i32_0 = arith.constant 0 : i32
    return %arg0, %c0_i32 : i32, i32
  }
  func.func @transform_1(%arg0: i32, %arg1: memref<1xi32, #tpu.memory_space<smem>>, %arg2: memref<3xf32, #tpu.memory_space<smem>>) -> (i32, i32) {
    %c0_i32 = arith.constant 0 : i32
    %c0_i32_0 = arith.constant 0 : i32
    return %arg0, %c0_i32 : i32, i32
  }
  func.func @transform_2(%arg0: i32, %arg1: memref<1xi32, #tpu.memory_space<smem>>, %arg2: memref<3xf32, #tpu.memory_space<smem>>) -> (i32, i32) {
    %c0_i32 = arith.constant 0 : i32
    %c0_i32_0 = arith.constant 0 : i32
    return %arg0, %c0_i32 : i32, i32
  }
  func.func @transform_3(%arg0: i32, %arg1: memref<1xi32, #tpu.memory_space<smem>>, %arg2: memref<3xf32, #tpu.memory_space<smem>>) -> (i32, i32) {
    %c0_i32 = arith.constant 0 : i32
    %c0_i32_0 = arith.constant 0 : i32
    %c0_i32_1 = arith.constant 0 : i32
    return %c0_i32, %c0_i32_0 : i32, i32
  }
  func.func @transform_4(%arg0: i32, %arg1: memref<1xi32, #tpu.memory_space<smem>>, %arg2: memref<3xf32, #tpu.memory_space<smem>>) -> (i32, i32) {
    %c0_i32 = arith.constant 0 : i32
    %c0_i32_0 = arith.constant 0 : i32
    %c0_i32_1 = arith.constant 0 : i32
    return %c0_i32, %c0_i32_0 : i32, i32
  }
  func.func @transform_5(%arg0: i32, %arg1: memref<1xi32, #tpu.memory_space<smem>>, %arg2: memref<3xf32, #tpu.memory_space<smem>>) -> (i32, i32) {
    %c0_i32 = arith.constant 0 : i32
    %c0_i32_0 = arith.constant 0 : i32
    %c0_i32_1 = arith.constant 0 : i32
    return %c0_i32, %c0_i32_0 : i32, i32
  }
  func.func @transform_6(%arg0: i32, %arg1: memref<1xi32, #tpu.memory_space<smem>>, %arg2: memref<3xf32, #tpu.memory_space<smem>>) -> (i32, i32) {
    %c0_i32 = arith.constant 0 : i32
    %c0_i32_0 = arith.constant 0 : i32
    return %arg0, %c0_i32 : i32, i32
  }
}

</mosaic_0001>

<bundles_post_ra>
// kernel: sine_forward.1
= control target key start
LH: loop header
LB: loop body
LE: loop exit
PB: predicated region body
PF: predicated region fallthrough
CT: control target
= control target key end

     0   :  { %s520_s0 = inlined_call_operand.<no memory space> [shape: s32[1], index: 0, kind: input, shape index: {}]   ;;  %s521_s1 = inlined_call_operand.vmem [shape: f32[3], index: 1, kind: input, shape index: {}]   ;;  %s522_s2 = inlined_call_operand.vmem [shape: f32[8,32], index: 2, kind: input, shape index: {}]   ;;  %s523_s3 = inlined_call_operand.vmem [shape: f32[8,32], index: 3, kind: input, shape index: {}]   ;;  %s524_s4 = inlined_call_operand.vmem [shape: f32[8,32], index: 4, kind: input, shape index: {}]   ;;  %s525_s5 = inlined_call_operand.vmem [shape: f32[32,32], index: 5, kind: input, shape index: {}]   ;;  %s526_s6 = inlined_call_operand.vmem [shape: f32[32,32], index: 6, kind: input, shape index: {}]   ;;  %s527_s7 = inlined_call_operand.vmem [shape: f32[1,32], index: 7, kind: input, shape index: {}]   ;;  %s528_s8 = inlined_call_operand.vmem [shape: f32[8,128], index: 8, kind: output, shape index: {}]  }
   0x1   :  { %s14_s28 = sshll.u32 %s521_s1, 4  ;;  %s15_s28 = int_to_ptr.vmem [resolvable:$true] %s14_s28 }
   0x2   :  { %s407_s29 = scalar_lea.vmem %s15_s28, 16  ;;  %p412_p1 = scmp.lt.s32.totalorder %s15_s28, %s15_s28 }
   0x3   :  { %p408_p0 = scmp.ne.s32.totalorder %s15_s28, %s407_s29  ;;  %p413_p2 = scmp.lt.s32.totalorder %s407_s29, %s407_s29 }
   0x5   :  { %p414_p3 = por %p413_p2, %p412_p1 }
   0x7   :  { %p415_p4 = pnand %p414_p3, %p408_p0 }
   0x9   :  { %418 = shalt.err (!%p415_p4)  }
   0xa   :  { %s421_s30 = smov [#allocation4]  }
   0xb   :  { %17 = dma.vmem_to_smem %s15_s28, 16, %s421_s30, [#allocation2] }
   0xc   :  { %419 = dma.done.wait [#allocation2], 16 }
   0xd   :  { %420 = vsyncadd [#allocation2], 4294967280 }
   0xe   :  { %19 = sfence }
   0xf   :  { %v36_v0 = vld [vmem:[%s525_s5] sm:$0xff]  ;;  %v37_v1 = vld [vmem:[%s525_s5 + $0x8] sm:$0xff]  ;;  %v422_v3 = vmov 0.0|0.0   ;;  %v38_v6 = vld [vmem:[%s525_s5 + $0x10] sm:$0xff]  ;;  %vm423_vm0 = vmmov 0   ;;  %v424_v11 = vmov 0.0   ;;  %v308_v54 = vlaneseq }
  0x10   :  { %v115_v2 = vld [vmem:[%s526_s6] sm:$0xff]  ;;  %375 = vmatprep.subr.bf16.mxu0 %v422_v3  ;;  %v376_v4 = vpack.c.bf16 %v37_v1, %v36_v0  ;;  %381 = vmatprep.subr.bf16.mxu1 %v422_v3  ;;  %v116_v5 = vld [vmem:[%s526_s6 + $0x8] sm:$0xff]  ;;  %v39_v7 = vld [vmem:[%s525_s5 + $0x18] sm:$0xff]  ;;  %vm40_vm1 = vcmask 261120   ;;  %s32_s28 = sld [smem:[#allocation4]]  ;;  %vm297_vm2 = vcmask 7168  }
  0x11   :  { %v382_v8 = vpack.c.bf16 %v116_v5, %v115_v2  ;;  %v117_v9 = vld [vmem:[%s526_s6 + $0x10] sm:$0xff]  ;;  %v118_v10 = vld [vmem:[%s526_s6 + $0x18] sm:$0xff]  ;;  %350 = vmatprep.mubr.msk.f32.mxu0 %vm423_vm0, %v424_v11  ;;  %361 = vmatprep.mubr.msk.f32.mxu1 %vm423_vm0, %v424_v11  ;;  %v379_v12 = vpack.c.bf16 %v39_v7, %v38_v6  ;;  %v35_v14 = vld [vmem:[%s522_s2] sm:$0xff]  ;;  %s321_s2 = sld [smem:[#allocation4 + $0x1]]  ;;  %v309_v55 = vshrl.u32 %v308_v54, 7  ;;  %v311_v56 = vand.u32 127, %v308_v54 }
  0x12   :  { %377 = vmatpush3.bf16.msra.mxu0 %v376_v4  ;;  %v385_v13 = vpack.c.bf16 %v118_v10, %v117_v9  ;;  %v114_v15 = vld [vmem:[%s523_s3] sm:$0xff] }
  0x13   :  { %383 = vmatpush3.bf16.msra.mxu1 %v382_v8  ;;  %378 = vmatprep.subr.bf16.mxu0 %v422_v3  ;;  %v192_v16 = vld [vmem:[%s524_s4] sm:$0xff]  ;;  %s322_s4 = sld [smem:[#allocation4 + $0x2]]  ;;  %v312_v57 = vadd.s32 %v311_v56, %v309_v55 }
  0x14   :  { %384 = vmatprep.subr.bf16.mxu1 %v422_v3  ;;  %v326_v28 = vld [vmem:[%s527_s7] ss:$0 sm:$0xff] }
  0x15   :  { %vm313_vm3 = vcmp.eq.s32.totalorder %v312_v57, 0 }
  0x16   :  { %380 = vmatpush3.bf16.msra.mxu0 %v379_v12  ;;  %v294_v42 = vstv %s32_s28 }
  0x17   :  { %386 = vmatpush3.bf16.msra.mxu1 %v385_v13  ;;  %387 = vmatprep.subr.bf16.mxu0 %v422_v3  ;;  %v267_v20 = vstv %s321_s2 }
  0x19   :  { %351 = vmatmul.mubr.msk.f32.vlgmr.msra.gmra.mrb[0].mxu0 %vm40_vm1, %v35_v14  ;;  %v284_v35 = vstv %s322_s4 }
  0x1a   :  { %362 = vmatmul.mubr.msk.f32.vlgmr.msra.gmra.mrb[0].mxu1 %vm40_vm1, %v114_v15  ;;  %389 = vmatpush3.bf16.msra.mxu0 %v382_v8 }
  0x1b   :  { %390 = vmatprep.subr.bf16.mxu0 %v422_v3  ;;  %372 = vmatprep.mubr.msk.f32.mxu0 %vm423_vm0, %v424_v11 }
  0x1e   :  { %392 = vmatpush3.bf16.msra.mxu0 %v385_v13 }
  0x21   :  { %373 = vmatmul.mubr.msk.f32.vlgmr.msra.gmra.mrb[2].mxu0 %vm40_vm1, %v192_v16 }
  0xec   :  { %v110_v17 = vpop.f32.mrb[0].mxu0 }
  0xed   :  { %v352_v18 = vpop.f32.mrb[1].mxu0  ;;  %v188_v19 = vpop.f32.mrb[0].mxu1 }
  0xee   :  { %v266_v21 = vadd.f32 %v188_v19, %v110_v17  ;;  %v363_v22 = vpop.f32.mrb[1].mxu1 }
  0xf0   :  { %v268_v23 = vadd.f32 %v267_v20, %v266_v21 }
  0xf2   :  { %399 = vtanh.f32 %v268_v23 }
  0xf4   :  { %v262_v24 = vpop.f32.mrb[2].mxu0 }
  0xf5   :  { %v270_v25 = vadd.f32 %v262_v24, %v110_v17  ;;  %v374_v26 = vpop.f32.mrb[3].mxu0 }
  0xf7   :  { %v271_v27 = vadd.f32 %v270_v25, %v267_v20 }
  0xf9   :  { %401 = vtanh.f32 %v271_v27 }
  0xfc   :  { %v400_v29 = vpop.eup %399 }
  0xfd   :  { %v280_v30 = vmul.f32 %v400_v29, %v326_v28 }
  0xff   :  { %v281_v31 = vsel %vm40_vm1, %v280_v30, 0.0 }
 0x100   :  { %282 = vadd.xlane.f32.xlu0 %v281_v31 }
 0x103   :  { %v402_v32 = vpop.eup %401 }
 0x104   :  { %v287_v33 = vmul.f32 %v402_v32, %v326_v28 }
 0x106   :  { %v288_v34 = vsel %vm40_vm1, %v287_v33, 0.0 }
 0x107   :  { %289 = vadd.xlane.f32.xlu0 %v288_v34 }
 0x18d   :  { %v283_v36 = vpop.xlane.xlu0 %282 }
 0x18e   :  { %v285_v37 = vadd.f32 %v284_v35, %v283_v36 }
 0x190   :  { %403 = vtanh.f32 %v285_v37 }
 0x194   :  { %v290_v38 = vpop.xlane.xlu0 %289 }
 0x195   :  { %v291_v39 = vadd.f32 %v290_v38, %v284_v35 }
 0x197   :  { %405 = vtanh.f32 %v291_v39 }
 0x19a   :  { %v404_v40 = vpop.eup %403 }
 0x1a1   :  { %v406_v41 = vpop.eup %405 }
 0x1a2   :  { %v293_v43 = vsub.f32 %v404_v40, %v406_v41 }
 0x1a4   :  { %v295_v44 = vadd.f32 %v294_v42, %v293_v43 }
 0x1a6   :  { %v296_v45 = vmax.f32 %v295_v44, 0.0 }
 0x1a8   :  { %v298_v46 = vsel %vm297_vm2, %v296_v45, 0.0 }
 0x1a9   :  { %299 = vadd.xlane.f32.xlu1 %v298_v46 }
 0x236   :  { %v300_v47 = vpop.xlane.xlu1 %299 }
 0x237   :  { %v301_v48 = vrot.slane %v300_v47, 4 }
 0x239   :  { %v302_v49 = vadd.f32 %v301_v48, %v300_v47 }
 0x23b   :  { %v303_v50 = vrot.slane %v302_v49, 2 }
 0x23d   :  { %v304_v51 = vadd.f32 %v303_v50, %v302_v49 }
 0x23f   :  { %v305_v52 = vrot.slane %v304_v51, 1 }
 0x241   :  { %v306_v53 = vadd.f32 %v305_v52, %v304_v51 }
 0x243   :  { %393 = vpush %v306_v53 }
 0x274   :  { %s394_s7 = spop %393 }
 0x275   :  { %v314_v58 = vstv %s394_s7 }
 0x276   :  { %v315_v59 = vsel %vm313_vm3, %v314_v58, 0.0 }
 0x277   :  { %316 = vst [vmem:[%s528_s8] sm:$0xff] %v315_v59 }

</bundles_post_ra>
